<compile_context>
chip_gen: v7x
topology: tpu7x:2x2x1
jax: 0.10.0
libtpu: 0.0.40
codegen_flags: <defaults>
</compile_context>

<pallas_src>
import jax
import jax.numpy as jnp
from jax import lax
from jax.experimental import pallas as pl
from jax.experimental.pallas import tpu as pltpu


def _round_up(x, m):
    return ((x + m - 1) // m) * m


def _bert_embeddings_kernel(ids_ref, pos_ref, tt_ref,
                            word_tbl_ref, pos_tbl_ref, tt_tbl_ref,
                            gamma_ref, beta_ref, o_ref):
    """Fused embedding-sum + LayerNorm for one block of `tb` tokens.

    ids_ref / pos_ref / tt_ref : (tb, 1) int32 token / position / type ids
    *_tbl_ref                  : full embedding tables resident in VMEM
    gamma_ref / beta_ref       : (1, H) LayerNorm affine params
    o_ref                      : (tb, H) output block
    """
    tb = ids_ref.shape[0]

    def gather(idx_ref, tbl_ref):
        tbl = tbl_ref[...]
        v = tbl.shape[0]
        cols = lax.broadcasted_iota(jnp.int32, (tb, v), 1)
        onehot = (idx_ref[...] == cols).astype(tbl.dtype)       # (tb, v)
        # Exact row selection via MXU matmul (0/1 weights, f32 accumulate).
        return jnp.dot(onehot, tbl, preferred_element_type=jnp.float32)

    emb = gather(ids_ref, word_tbl_ref)
    emb = emb + gather(pos_ref, pos_tbl_ref)
    emb = emb + gather(tt_ref, tt_tbl_ref)                      # (tb, H) f32

    # LayerNorm over hidden (lane axis), eps = 1e-12 (BertLayerNorm).
    mean = jnp.mean(emb, axis=-1, keepdims=True)
    xc = emb - mean
    var = jnp.mean(xc * xc, axis=-1, keepdims=True)
    inv = lax.rsqrt(var + jnp.float32(1e-12))
    y = xc * inv
    y = y * gamma_ref[...].astype(jnp.float32) + beta_ref[...].astype(jnp.float32)

    # Dropout: eval-mode identity.
    o_ref[...] = y.astype(o_ref.dtype)


def bert_embeddings_pallas(input_ids, token_type_ids,
                           word_table, position_table, token_type_table,
                           ln_gamma, ln_beta, *, row_tile=512):
    """BertEmbeddings forward (eval mode).

    input_ids, token_type_ids : (B, S) int
    word_table                : (vocab, H)
    position_table            : (max_pos, H)
    token_type_table          : (type_vocab, H)
    ln_gamma, ln_beta         : (H,)
    Returns (B, S, H) in word_table.dtype.
    """
    B, S = input_ids.shape
    H = word_table.shape[1]

    # position_ids = arange(S) broadcast over the batch (as in the PyTorch ref).
    position_ids = jnp.broadcast_to(jnp.arange(S, dtype=jnp.int32)[None, :], (B, S))

    n = B * S
    ids = input_ids.reshape(n, 1).astype(jnp.int32)
    pos = position_ids.reshape(n, 1).astype(jnp.int32)
    tts = token_type_ids.reshape(n, 1).astype(jnp.int32)

    # Large row tile (amortizes ~0.35us/step overhead); multiple of 8 sublanes.
    tb = min(row_tile, _round_up(n, 8))
    tb = _round_up(tb, 8)
    n_pad = _round_up(n, tb)
    if n_pad != n:
        pad = ((0, n_pad - n), (0, 0))
        ids = jnp.pad(ids, pad)   # padded rows gather row 0; sliced off below
        pos = jnp.pad(pos, pad)
        tts = jnp.pad(tts, pad)

    # Pad table row counts to multiples of 8 (zero rows) so the MXU
    # contraction dims are cleanly tiled.  Gather results are unchanged.
    def pad_rows(tbl):
        r = tbl.shape[0]
        rp = _round_up(r, 8)
        return tbl if rp == r else jnp.pad(tbl, ((0, rp - r), (0, 0)))

    word_tbl = pad_rows(word_table)
    pos_tbl = pad_rows(position_table)
    tt_tbl = pad_rows(token_type_table)

    gamma2 = ln_gamma.reshape(1, H)
    beta2 = ln_beta.reshape(1, H)

    grid = (n_pad // tb,)
    id_spec = pl.BlockSpec((tb, 1), lambda i: (i, 0))

    def full_spec(arr):
        return pl.BlockSpec(arr.shape, lambda i: (0, 0))

    out = pl.pallas_call(
        _bert_embeddings_kernel,
        out_shape=jax.ShapeDtypeStruct((n_pad, H), word_table.dtype),
        grid_spec=pltpu.PrefetchScalarGridSpec(
            num_scalar_prefetch=0,
            grid=grid,
            in_specs=[
                id_spec, id_spec, id_spec,
                full_spec(word_tbl), full_spec(pos_tbl), full_spec(tt_tbl),
                full_spec(gamma2), full_spec(beta2),
            ],
            out_specs=pl.BlockSpec((tb, H), lambda i: (i, 0)),
        ),
        compiler_params=pltpu.CompilerParams(
            dimension_semantics=("parallel",),
        ),
    )(ids, pos, tts, word_tbl, pos_tbl, tt_tbl, gamma2, beta2)

    return out[:n].reshape(B, S, H)


if __name__ == "__main__":
    key = jax.random.PRNGKey(0)

    # Small config consistent with the module:
    #   batch=2, seq=8, hidden=32, vocab=64, max_pos=16, type_vocab=2
    B, S, H = 2, 8, 32
    V, P, T = 64, 16, 2

    k1, k2, k3, k4, k5, k6, k7 = jax.random.split(key, 7)
    input_ids = jax.random.randint(k1, (B, S), 1, V, dtype=jnp.int32)
    token_type_ids = jax.random.randint(k2, (B, S), 0, T, dtype=jnp.int32)

    word_table = 0.02 * jax.random.normal(k3, (V, H), dtype=jnp.float32)
    word_table = word_table.at[0].set(0.0)  # padding_idx=0
    position_table = 0.02 * jax.random.normal(k4, (P, H), dtype=jnp.float32)
    token_type_table = 0.02 * jax.random.normal(k5, (T, H), dtype=jnp.float32)
    ln_gamma = 1.0 + 0.1 * jax.random.normal(k6, (H,), dtype=jnp.float32)
    ln_beta = 0.1 * jax.random.normal(k7, (H,), dtype=jnp.float32)

    out = bert_embeddings_pallas(
        input_ids, token_type_ids,
        word_table, position_table, token_type_table,
        ln_gamma, ln_beta,
    )
    jax.block_until_ready(out)

    # Pure-JAX reference (eval-mode forward: dropout is identity).
    position_ids = jnp.broadcast_to(jnp.arange(S)[None, :], (B, S))
    emb = (word_table[input_ids]
           + position_table[position_ids]
           + token_type_table[token_type_ids])
    mean = emb.mean(-1, keepdims=True)
    var = ((emb - mean) ** 2).mean(-1, keepdims=True)
    ref = (emb - mean) / jnp.sqrt(var + 1e-12) * ln_gamma + ln_beta

    assert out.shape == (B, S, H)
    assert jnp.allclose(out, ref, atol=1e-5, rtol=1e-5), "mismatch vs reference"
    print("KERNEL_OK")
</pallas_src>

<mosaic_0001>
module attributes {stable_mosaic.version = 11 : i64} {
  func.func @_bert_embeddings_kernel(%arg0: i32, %arg1: memref<16x1xi32, #tpu.memory_space<vmem>>, %arg2: memref<16x1xi32, #tpu.memory_space<vmem>>, %arg3: memref<16x1xi32, #tpu.memory_space<vmem>>, %arg4: memref<64x32xf32, #tpu.memory_space<vmem>>, %arg5: memref<16x32xf32, #tpu.memory_space<vmem>>, %arg6: memref<8x32xf32, #tpu.memory_space<vmem>>, %arg7: memref<1x32xf32, #tpu.memory_space<vmem>>, %arg8: memref<1x32xf32, #tpu.memory_space<vmem>>, %arg9: memref<16x32xf32, #tpu.memory_space<vmem>>) attributes {dimension_semantics = [#tpu.dimension_semantics<parallel>], iteration_bounds = array<i64: 1>, scalar_prefetch = 0 : i64, scratch_operands = 0 : i64, tpu.core_type = #tpu.core_type<tc>, window_params = [{transform_indices = @transform_0, window_bounds = array<i64: 16, 1>}, {transform_indices = @transform_1, window_bounds = array<i64: 16, 1>}, {transform_indices = @transform_2, window_bounds = array<i64: 16, 1>}, {pipeline_mode = #tpu.pipeline_mode<synchronous>, transform_indices = @transform_3, window_bounds = array<i64: 64, 32>}, {pipeline_mode = #tpu.pipeline_mode<synchronous>, transform_indices = @transform_4, window_bounds = array<i64: 16, 32>}, {pipeline_mode = #tpu.pipeline_mode<synchronous>, transform_indices = @transform_5, window_bounds = array<i64: 8, 32>}, {pipeline_mode = #tpu.pipeline_mode<synchronous>, transform_indices = @transform_6, window_bounds = array<i64: 1, 32>}, {pipeline_mode = #tpu.pipeline_mode<synchronous>, transform_indices = @transform_7, window_bounds = array<i64: 1, 32>}, {transform_indices = @transform_8, window_bounds = array<i64: 16, 32>}]} {
    %c0 = arith.constant 0 : index
    %c0_0 = arith.constant 0 : index
    %0 = vector.load %arg4[%c0, %c0_0] : memref<64x32xf32, #tpu.memory_space<vmem>>, vector<64x32xf32>
    %1 = tpu.iota {dimensions = array<i32: 1>} : vector<16x64xi32>
    %c0_1 = arith.constant 0 : index
    %c0_2 = arith.constant 0 : index
    %2 = vector.load %arg1[%c0_1, %c0_2] : memref<16x1xi32, #tpu.memory_space<vmem>>, vector<16x1xi32>
    %3 = vector.broadcast %2 : vector<16x1xi32> to vector<16x64xi32>
    %4 = arith.cmpi eq, %3, %1 : vector<16x64xi32>
    %5 = arith.extui %4 : vector<16x64xi1> to vector<16x64xi32>
    %6 = arith.sitofp %5 : vector<16x64xi32> to vector<16x64xf32>
    %cst = arith.constant dense<0.000000e+00> : vector<16x32xf32>
    %7 = tpu.matmul %6, %0, %cst {dimension_numbers = #tpu.dot_dimension_numbers<[1], [0], [0], [1], [0, 0, 1, 1], [], []>} : vector<16x64xf32>, vector<64x32xf32>, vector<16x32xf32> -> vector<16x32xf32>
    %c0_3 = arith.constant 0 : index
    %c0_4 = arith.constant 0 : index
    %8 = vector.load %arg5[%c0_3, %c0_4] : memref<16x32xf32, #tpu.memory_space<vmem>>, vector<16x32xf32>
    %9 = tpu.iota {dimensions = array<i32: 1>} : vector<16x16xi32>
    %c0_5 = arith.constant 0 : index
    %c0_6 = arith.constant 0 : index
    %10 = vector.load %arg2[%c0_5, %c0_6] : memref<16x1xi32, #tpu.memory_space<vmem>>, vector<16x1xi32>
    %11 = vector.broadcast %10 : vector<16x1xi32> to vector<16x16xi32>
    %12 = arith.cmpi eq, %11, %9 : vector<16x16xi32>
    %13 = arith.extui %12 : vector<16x16xi1> to vector<16x16xi32>
    %14 = arith.sitofp %13 : vector<16x16xi32> to vector<16x16xf32>
    %cst_7 = arith.constant dense<0.000000e+00> : vector<16x32xf32>
    %15 = tpu.matmul %14, %8, %cst_7 {dimension_numbers = #tpu.dot_dimension_numbers<[1], [0], [0], [1], [0, 0, 1, 1], [], []>} : vector<16x16xf32>, vector<16x32xf32>, vector<16x32xf32> -> vector<16x32xf32>
    %16 = arith.addf %7, %15 : vector<16x32xf32>
    %c0_8 = arith.constant 0 : index
    %c0_9 = arith.constant 0 : index
    %17 = vector.load %arg6[%c0_8, %c0_9] : memref<8x32xf32, #tpu.memory_space<vmem>>, vector<8x32xf32>
    %18 = tpu.iota {dimensions = array<i32: 1>} : vector<16x8xi32>
    %c0_10 = arith.constant 0 : index
    %c0_11 = arith.constant 0 : index
    %19 = vector.load %arg3[%c0_10, %c0_11] : memref<16x1xi32, #tpu.memory_space<vmem>>, vector<16x1xi32>
    %20 = vector.broadcast %19 : vector<16x1xi32> to vector<16x8xi32>
    %21 = arith.cmpi eq, %20, %18 : vector<16x8xi32>
    %22 = arith.extui %21 : vector<16x8xi1> to vector<16x8xi32>
    %23 = arith.sitofp %22 : vector<16x8xi32> to vector<16x8xf32>
    %cst_12 = arith.constant dense<0.000000e+00> : vector<16x32xf32>
    %24 = tpu.matmul %23, %17, %cst_12 {dimension_numbers = #tpu.dot_dimension_numbers<[1], [0], [0], [1], [0, 0, 1, 1], [], []>} : vector<16x8xf32>, vector<8x32xf32>, vector<16x32xf32> -> vector<16x32xf32>
    %25 = arith.addf %16, %24 : vector<16x32xf32>
    %cst_13 = arith.constant dense<0.000000e+00> : vector<16xf32>
    %26 = vector.multi_reduction <add>, %25, %cst_13 [1] : vector<16x32xf32> to vector<16xf32>
    %27 = vector.shape_cast %26 : vector<16xf32> to vector<16x1xf32>
    %cst_14 = arith.constant 3.200000e+01 : f32
    %28 = vector.broadcast %cst_14 : f32 to vector<16x1xf32>
    %29 = arith.divf %27, %28 : vector<16x1xf32>
    %30 = vector.broadcast %29 : vector<16x1xf32> to vector<16x32xf32>
    %31 = arith.subf %25, %30 : vector<16x32xf32>
    %32 = arith.mulf %31, %31 : vector<16x32xf32>
    %cst_15 = arith.constant dense<0.000000e+00> : vector<16xf32>
    %33 = vector.multi_reduction <add>, %32, %cst_15 [1] : vector<16x32xf32> to vector<16xf32>
    %34 = vector.shape_cast %33 : vector<16xf32> to vector<16x1xf32>
    %cst_16 = arith.constant 3.200000e+01 : f32
    %35 = vector.broadcast %cst_16 : f32 to vector<16x1xf32>
    %36 = arith.divf %34, %35 : vector<16x1xf32>
    %cst_17 = arith.constant 9.99999996E-13 : f32
    %37 = vector.broadcast %cst_17 : f32 to vector<16x1xf32>
    %38 = arith.addf %36, %37 : vector<16x1xf32>
    %39 = math.rsqrt %38 : vector<16x1xf32>
    %40 = vector.broadcast %39 : vector<16x1xf32> to vector<16x32xf32>
    %41 = arith.mulf %31, %40 : vector<16x32xf32>
    %c0_18 = arith.constant 0 : index
    %c0_19 = arith.constant 0 : index
    %42 = vector.load %arg7[%c0_18, %c0_19] : memref<1x32xf32, #tpu.memory_space<vmem>>, vector<1x32xf32>
    %43 = vector.broadcast %42 : vector<1x32xf32> to vector<16x32xf32>
    %44 = arith.mulf %41, %43 : vector<16x32xf32>
    %c0_20 = arith.constant 0 : index
    %c0_21 = arith.constant 0 : index
    %45 = vector.load %arg8[%c0_20, %c0_21] : memref<1x32xf32, #tpu.memory_space<vmem>>, vector<1x32xf32>
    %46 = vector.broadcast %45 : vector<1x32xf32> to vector<16x32xf32>
    %47 = arith.addf %44, %46 : vector<16x32xf32>
    %c0_22 = arith.constant 0 : index
    %c0_23 = arith.constant 0 : index
    %48 = vector.load %arg9[%c0_22, %c0_23] : memref<16x32xf32, #tpu.memory_space<vmem>>, vector<16x32xf32>
    tpu.vector_store %arg9[%c0_22, %c0_23], %47 {strides = array<i32>} : memref<16x32xf32, #tpu.memory_space<vmem>>, vector<16x32xf32>,
    return
  }
  func.func @transform_0(%arg0: i32) -> (i32, i32) {
    %c0_i32 = arith.constant 0 : i32
    %c0_i32_0 = arith.constant 0 : i32
    return %arg0, %c0_i32 : i32, i32
  }
  func.func @transform_1(%arg0: i32) -> (i32, i32) {
    %c0_i32 = arith.constant 0 : i32
    %c0_i32_0 = arith.constant 0 : i32
    return %arg0, %c0_i32 : i32, i32
  }
  func.func @transform_2(%arg0: i32) -> (i32, i32) {
    %c0_i32 = arith.constant 0 : i32
    %c0_i32_0 = arith.constant 0 : i32
    return %arg0, %c0_i32 : i32, i32
  }
  func.func @transform_3(%arg0: i32) -> (i32, i32) {
    %c0_i32 = arith.constant 0 : i32
    %c0_i32_0 = arith.constant 0 : i32
    %c0_i32_1 = arith.constant 0 : i32
    return %c0_i32, %c0_i32_0 : i32, i32
  }
  func.func @transform_4(%arg0: i32) -> (i32, i32) {
    %c0_i32 = arith.constant 0 : i32
    %c0_i32_0 = arith.constant 0 : i32
    %c0_i32_1 = arith.constant 0 : i32
    return %c0_i32, %c0_i32_0 : i32, i32
  }
  func.func @transform_5(%arg0: i32) -> (i32, i32) {
    %c0_i32 = arith.constant 0 : i32
    %c0_i32_0 = arith.constant 0 : i32
    %c0_i32_1 = arith.constant 0 : i32
    return %c0_i32, %c0_i32_0 : i32, i32
  }
  func.func @transform_6(%arg0: i32) -> (i32, i32) {
    %c0_i32 = arith.constant 0 : i32
    %c0_i32_0 = arith.constant 0 : i32
    %c0_i32_1 = arith.constant 0 : i32
    return %c0_i32, %c0_i32_0 : i32, i32
  }
  func.func @transform_7(%arg0: i32) -> (i32, i32) {
    %c0_i32 = arith.constant 0 : i32
    %c0_i32_0 = arith.constant 0 : i32
    %c0_i32_1 = arith.constant 0 : i32
    return %c0_i32, %c0_i32_0 : i32, i32
  }
  func.func @transform_8(%arg0: i32) -> (i32, i32) {
    %c0_i32 = arith.constant 0 : i32
    %c0_i32_0 = arith.constant 0 : i32
    return %arg0, %c0_i32 : i32, i32
  }
}

</mosaic_0001>

<bundles_post_ra>
// kernel: tpu_custom_call.1
= control target key start
LH: loop header
LB: loop body
LE: loop exit
PB: predicated region body
PF: predicated region fallthrough
CT: control target
= control target key end

     0   :  { %v518_v2 = vmov 0   ;;  %s643_s0 = inlined_call_operand.vmem [shape: s32[16,1], index: 0, kind: input, shape index: {}]   ;;  %s644_s1 = inlined_call_operand.vmem [shape: s32[16,1], index: 1, kind: input, shape index: {}]   ;;  %s645_s2 = inlined_call_operand.vmem [shape: s32[16,1], index: 2, kind: input, shape index: {}]   ;;  %s646_s3 = inlined_call_operand.vmem [shape: f32[64,32], index: 3, kind: input, shape index: {}]   ;;  %s647_s4 = inlined_call_operand.vmem [shape: f32[16,32], index: 4, kind: input, shape index: {}]   ;;  %s648_s5 = inlined_call_operand.vmem [shape: f32[8,32], index: 5, kind: input, shape index: {}]   ;;  %s649_s6 = inlined_call_operand.vmem [shape: f32[1,32], index: 6, kind: input, shape index: {}]   ;;  %s650_s7 = inlined_call_operand.vmem [shape: f32[1,32], index: 7, kind: input, shape index: {}]   ;;  %s651_s8 = inlined_call_operand.hbm [shape: f32[16,32], index: 8, kind: output, shape index: {}]  }
   0x1   :  { %v56_v0 = vld [vmem:[%s644_s1] sm:$0xff]  ;;  %489 = vset.pattern.permute.xlu1 %v518_v2  ;;  %488 = vset.pattern.permute.xlu0 %v518_v2  ;;  %v31_v4 = vld [vmem:[%s646_s3 + $0x8] sm:$0xff]  ;;  %v32_v5 = vld [vmem:[%s646_s3 + $0x10] sm:$0xff] }
   0x2   :  { %v40_v1 = vld [vmem:[%s643_s0] sm:$0xff]  ;;  %59 = vperm.xlu0 %488, %v56_v0   ;;  %v57_v6 = vld [vmem:[%s644_s1 + $0x8] sm:$0xff]  ;;  %v33_v9 = vld [vmem:[%s646_s3 + $0x18] sm:$0xff] }
   0x3   :  { %43 = vperm.xlu1 %489, %v40_v1   ;;  %v30_v3 = vld [vmem:[%s646_s3] sm:$0xff]  ;;  %v41_v7 = vld [vmem:[%s643_s0 + $0x8] sm:$0xff]  ;;  %v467_v10 = vpack.c.bf16 %v33_v9, %v32_v5 }
   0x4   :  { %v463_v8 = vpack.c.bf16 %v31_v4, %v30_v3  ;;  %v54_v11 = vld [vmem:[%s647_s4] sm:$0xff]  ;;  %v55_v12 = vld [vmem:[%s647_s4 + $0x8] sm:$0xff] }
   0x5   :  { %v34_v13 = vld [vmem:[%s646_s3 + $0x20] sm:$0xff]  ;;  %v35_v14 = vld [vmem:[%s646_s3 + $0x28] sm:$0xff]  ;;  %v459_v15 = vpack.c.bf16 %v55_v12, %v54_v11 }
   0x6   :  { %464 = vmatprep.subr.bf16.mxu1 %v463_v8 }
   0x7   :  { %13 = vsyncpa [#allocation3], 0  ;;  %62 = vperm.xlu0 %488, %v57_v6   ;;  %46 = vperm.xlu1 %489, %v41_v7   ;;  %v235_v16 = vld [vmem:[%s645_s2] sm:$0xff]  ;;  %v236_v17 = vld [vmem:[%s645_s2 + $0x8] sm:$0xff]  ;;  %v471_v18 = vpack.c.bf16 %v35_v14, %v34_v13  ;;  %v38_v23 = vlaneseq  ;;  %vm70_vm0 = vcmask 130048   ;;  %vm152_vm1 = vcmask 523264  }
   0x8   :  { %466 = vmatpush3.bf16.msra.mxu1 %v463_v8  ;;  %460 = vmatprep.subr.bf16.mxu0 %v459_v15  ;;  %v234_v19 = vld [vmem:[%s648_s5] sm:$0xff]  ;;  %v36_v20 = vld [vmem:[%s646_s3 + $0x30] sm:$0xff]  ;;  %v37_v21 = vld [vmem:[%s646_s3 + $0x38] sm:$0xff]  ;;  %v519_v27 = vmov 0.0   ;;  %vm249_vm6 = vcmask 64512   ;;  %vm333_vm9 = vcmask 261120  }
   0x9   :  { %468 = vmatprep.subr.bf16.mxu1 %v467_v10  ;;  %462 = vmatpush3.bf16.msra.mxu0 %v459_v15  ;;  %v475_v22 = vpack.c.bf16 %v37_v21, %v36_v20  ;;  %v39_v24 = vand.u32 127, %v38_v23  ;;  %v409_v3 = vld [vmem:[%s649_s6] ss:$0 sm:$0xff]  ;;  %s520_s15 = smov [#allocation2]  }
   0xa   :  { %454 = vmatprep.subr.mxu0 %v234_v19  ;;  %v410_v5 = vld [vmem:[%s650_s7] ss:$0 sm:$0xff]  ;;  %s386_s16 = sshll.u32 %s520_s15, 4  ;;  %s387_s16 = int_to_ptr.vmem [resolvable:$true] %s386_s16 }
   0xb   :  { %238 = vperm.xlu0 %488, %v235_v16   ;;  %241 = vperm.xlu1 %489, %v236_v17   ;;  %s494_s17 = scalar_lea.vmem %s387_s16, 256  ;;  %p499_p1 = scmp.lt.s32.totalorder %s387_s16, %s387_s16 }
   0xc   :  { %470 = vmatpush3.bf16.msra.mxu1 %v467_v10  ;;  %p495_p0 = scmp.ne.s32.totalorder %s387_s16, %s494_s17  ;;  %p500_p2 = scmp.lt.s32.totalorder %s494_s17, %s494_s17 }
   0xd   :  { %472 = vmatprep.subr.bf16.mxu1 %v471_v18 }
   0xe   :  { %p501_p3 = por %p500_p2, %p499_p1 }
  0x10   :  { %474 = vmatpush3.bf16.msra.mxu1 %v471_v18  ;;  %p502_p4 = pnand %p501_p3, %p495_p0 }
  0x11   :  { %476 = vmatprep.subr.bf16.mxu1 %v475_v22 }
  0x14   :  { %478 = vmatpush3.bf16.msra.mxu1 %v475_v22 }
  0x81   :  { %v60_v25 = vpop.permute.xlu0 %59 }
  0x82   :  { %v44_v26 = vpop.permute.xlu1 %43  ;;  %vm64_vm2 = vcmp.eq.s32.totalorder %v60_v25, %v39_v24 }
  0x83   :  { %vm48_vm3 = vcmp.eq.s32.totalorder %v44_v26, %v39_v24  ;;  %v399_v28 = vsel %vm64_vm2, 1.0, %v519_v27 }
  0x84   :  { %v397_v29 = vsel %vm48_vm3, 1.0, %v519_v27  ;;  %432 = vmatprep.mubr.msk.f32.mxu0 %vm70_vm0, %v399_v28 }
  0x85   :  { %451 = vmatprep.mubr.msk.f32.mxu1 %vm152_vm1, %v397_v29 }
  0x86   :  { %v63_v30 = vpop.permute.xlu0 %62  ;;  %v47_v31 = vpop.permute.xlu1 %46 }
  0x87   :  { %vm65_vm4 = vcmp.eq.s32.totalorder %v63_v30, %v39_v24  ;;  %vm49_vm5 = vcmp.eq.s32.totalorder %v47_v31, %v39_v24 }
  0x88   :  { %v400_v32 = vsel %vm65_vm4, 1.0, %v519_v27  ;;  %v398_v33 = vsel %vm49_vm5, 1.0, %v519_v27 }
  0x89   :  { %433 = vmatmul.mubr.msk.f32.vlgmr.msra.gmra.mrb[0].mxu0 %vm70_vm0, %v400_v32  ;;  %452 = vmatmul.mubr.msk.f32.vlgmr.msra.gmra.mrb[0].mxu1 %vm152_vm1, %v398_v33 }
  0x8a   :  { %v239_v34 = vpop.permute.xlu0 %238  ;;  %v242_v35 = vpop.permute.xlu1 %241  ;;  %455 = vmatpush3.msra.mxu0 %v234_v19 }
  0x8b   :  { %vm243_vm7 = vcmp.eq.s32.totalorder %v239_v34, %v39_v24  ;;  %vm244_vm8 = vcmp.eq.s32.totalorder %v242_v35, %v39_v24 }
  0x8c   :  { %v405_v36 = vsel %vm243_vm7, 1.0, %v519_v27  ;;  %v406_v37 = vsel %vm244_vm8, 1.0, %v519_v27 }
  0x8d   :  { %456 = vmatprep.mubr.msk.f32.mxu0 %vm249_vm6, %v405_v36 }
  0x8e   :  { %457 = vmatmul.mubr.msk.f32.vlgmr.msra.gmra.mrb[2].mxu0 %vm249_vm6, %v406_v37 }
 0x15c   :  { %v434_v38 = vpop.f32.mrb[0].mxu0  ;;  %v453_v39 = vpop.f32.mrb[0].mxu1 }
 0x15d   :  { %v231_v40 = vadd.f32 %v453_v39, %v434_v38  ;;  %v143_v41 = vpop.f32.mrb[1].mxu0  ;;  %v225_v42 = vpop.f32.mrb[1].mxu1 }
 0x15e   :  { %v226_v43 = vadd.f32 %v225_v42, %v143_v41 }
 0x161   :  { %v458_v44 = vpop.f32.mrb[2].mxu0 }
 0x162   :  { %v332_v45 = vadd.f32 %v458_v44, %v231_v40  ;;  %v322_v46 = vpop.f32.mrb[3].mxu0 }
 0x163   :  { %v331_v47 = vadd.f32 %v322_v46, %v226_v43 }
 0x164   :  { %v337_v48 = vsel %vm333_vm9, %v332_v45, 0.0 }
 0x165   :  { %338 = vadd.xlane.f32.xlu1 %v337_v48  ;;  %v334_v49 = vsel %vm333_vm9, %v331_v47, 0.0 }
 0x166   :  { %335 = vadd.xlane.f32.xlu0 %v334_v49 }
 0x1f2   :  { %v339_v50 = vpop.xlane.xlu1 %338 }
 0x1f3   :  { %v342_v51 = vmul.f32 0.03125, %v339_v50  ;;  %v336_v52 = vpop.xlane.xlu0 %335 }
 0x1f4   :  { %v341_v53 = vmul.f32 0.03125, %v336_v52 }
 0x1f5   :  { %v344_v54 = vsub.f32 %v332_v45, %v342_v51 }
 0x1f6   :  { %v343_v55 = vsub.f32 %v331_v47, %v341_v53 }
 0x1f7   :  { %v346_v58 = vmul.f32 %v344_v54, %v344_v54 }
 0x1f8   :  { %v345_v56 = vmul.f32 %v343_v55, %v343_v55 }
 0x1f9   :  { %v350_v59 = vsel %vm333_vm9, %v346_v58, 0.0 }
 0x1fa   :  { %v347_v57 = vsel %vm333_vm9, %v345_v56, 0.0 }
 0x1fb   :  { %348 = vadd.xlane.f32.xlu0 %v347_v57 }
 0x1ff   :  { %351 = vadd.xlane.f32.xlu0 %v350_v59 }
 0x288   :  { %v349_v60 = vpop.xlane.xlu0 %348 }
 0x289   :  { %v353_v61 = vmul.f32 0.03125, %v349_v60 }
 0x28b   :  { %v355_v62 = vadd.f32 1e-12, %v353_v61 }
 0x28c   :  { %v352_v63 = vpop.xlane.xlu0 %351 }
 0x28d   :  { %490 = vrsqrt.f32 %v355_v62  ;;  %v354_v0 = vmul.f32 0.03125, %v352_v63 }
 0x28f   :  { %v356_v1 = vadd.f32 1e-12, %v354_v0 }
 0x291   :  { %492 = vrsqrt.f32 %v356_v1 }
 0x297   :  { %v491_v2 = vpop.eup %490 }
 0x298   :  { %v359_v4 = vmul.f32 %v491_v2, %v343_v55 }
 0x29a   :  { %v368_v6 = vmul.f32 %v409_v3, %v359_v4 }
 0x29b   :  { %v493_v7 = vpop.eup %492 }
 0x29c   :  { %v360_v8 = vmul.f32 %v493_v7, %v344_v54  ;;  %v377_v9 = vadd.f32 %v410_v5, %v368_v6 }
 0x29e   :  { %v369_v10 = vmul.f32 %v409_v3, %v360_v8  ;;  %379 = vst.msk [vmem:[#allocation2] sm:$0xff] %vm333_vm9, %v377_v9 }
 0x2a0   :  { %v378_v11 = vadd.f32 %v410_v5, %v369_v10 }
 0x2a2   :  { %380 = vst.msk [vmem:[#allocation2 + $0x8] sm:$0xff] %vm333_vm9, %v378_v11 }
 0x2a3   :  { %505 = shalt.err (!%p502_p4)
}
 0x2a4   :  { %s506_s18 = scalar_lea.hbm %s651_s8, 256 }
 0x2a5   :  { %p507_p5 = scmp.ne.s32.totalorder %s651_s8, %s506_s18  ;;  %p510_p6 = scmp.lt.u32.totalorder %s506_s18, %s651_s8 }
 0x2a7   :  { %p512_p7 = pnand %p510_p6, %p507_p5 }
 0x2a9   :  { %515 = shalt.err (!%p512_p7)
}
 0x2aa   :  { %s521_s23 = smov 128   ;;  %s522_s24 = smov 8  }
 0x2ab   :  { %392 = dma.vmem_to_hbm [thread:$0]  %s387_s16, 256, %s651_s8, [#allocation3], %s521_s23, %s521_s23, %s522_s24  }
 0x2ac   :  { %516 = dma.done.wait [#allocation3], 256  }
 0x2ad   :  { %517 = vsyncadd [#allocation3], 4294967040 }
 0x2ae   :  { %396 = vsyncpa [#allocation3], 1 }

</bundles_post_ra>
